<compile_context>
chip_gen: v7x
topology: tpu7x:2x2x1
jax: 0.10.0
libtpu: 0.0.40
codegen_flags: <defaults>
</compile_context>

<pallas_src>
import functools

import jax
import jax.numpy as jnp
from jax.experimental import pallas as pl
from jax.experimental.pallas import tpu as pltpu


def _mean_filter_kernel(x_ref, o_ref, xrow_ref, hs_ref, win_ref, *,
                        k, TH, W, S, round_out):
    """One (plane-block, strip-step) of a separable reflect-padded box blur.

    Grid axis 1 runs S + 1 steps.  Step s (s < S) computes the k-wide
    horizontal box sum of input row-strip s; step s (s >= 1) combines the
    carried horizontal sums (rows [(s-1)*TH - pad, s*TH)) with the current
    strip's first `pad` rows (bottom halo) to emit output row-strip s - 1.

    x_ref   : (PB, TH, W)           input strip  (strip index min(s, S-1))
    o_ref   : (PB, TH, W)           output strip (strip index max(s-1, 0))
    xrow_ref: (PB, TH, W + k - 1)   W-reflect-padded current strip (input dtype)
    hs_ref  : (PB, TH, W)           horizontal sums of the current strip
    win_ref : (PB, TH + k - 1, W)   carried rows + assembled vertical window
    """
    pad = (k - 1) // 2
    inv = 1.0 / float(k * k)
    s = pl.program_id(1)

    # ---- phase 1: horizontal pass over the freshly fetched strip ----------
    @pl.when(s < S)
    def _():
        # Reflect-pad along W directly in VMEM (no f32 copy of the input).
        xrow_ref[:, :, pad:pad + W] = x_ref[...]
        for p in range(1, pad + 1):
            xrow_ref[:, :, pad - p:pad - p + 1] = x_ref[:, :, p:p + 1]
            xrow_ref[:, :, pad + W - 1 + p:pad + W + p] = x_ref[:, :, W - 1 - p:W - p]
        # TODO(synk): the k-1 lane-shifted reads below bind on XLU/vld once the
        # kernel stops being HBM-bound; a banded ones-matrix MXU matmul
        # (v6e/v7x) or pltpu.roll dedup would make this pass nearly free.
        hsum = xrow_ref[:, :, 0:W].astype(jnp.float32)
        for d in range(1, k):
            hsum = hsum + xrow_ref[:, :, d:d + W].astype(jnp.float32)
        hs_ref[...] = hsum.astype(hs_ref.dtype)

    # ---- phase 2: emit output strip s - 1 ----------------------------------
    @pl.when(s >= 1)
    def _():
        # Bottom halo rows of the vertical window.
        @pl.when(s < S)
        def _():
            win_ref[:, TH + pad:TH + 2 * pad, :] = hs_ref[:, 0:pad, :]

        @pl.when(s == S)
        def _():
            # Global bottom reflection: padded row (H-1+d) -> row (H-1-d).
            for d in range(1, pad + 1):
                win_ref[:, TH + pad + d - 1:TH + pad + d, :] = (
                    win_ref[:, TH + pad - 1 - d:TH + pad - d, :])

        vsum = win_ref[:, 0:TH, :].astype(jnp.float32)
        for d in range(1, k):
            vsum = vsum + win_ref[:, d:d + TH, :].astype(jnp.float32)
        res = vsum * inv
        if round_out:
            res = jnp.round(res)
        o_ref[...] = res.astype(o_ref.dtype)

    # ---- phase 3: update the carried rows for the next step ---------------
    @pl.when(s < S)
    def _():
        @pl.when(s == 0)
        def _():
            # Carry <- padded rows [-pad, TH): global top reflection + strip 0.
            win_ref[:, pad:TH + pad, :] = hs_ref[...]
            for d in range(1, pad + 1):
                win_ref[:, pad - d:pad - d + 1, :] = hs_ref[:, d:d + 1, :]

        @pl.when(s > 0)
        def _():
            # Carry <- rows [s*TH - pad, (s+1)*TH).
            win_ref[:, 0:pad, :] = win_ref[:, TH:TH + pad, :]
            win_ref[:, pad:TH + pad, :] = hs_ref[...]


def _vmem_budget_bytes():
    """~72% of physical VMEM (leave headroom for compiler temporaries)."""
    cap = 128 << 20
    try:
        info = pltpu.get_tpu_info()
        cap = int(getattr(info, "vmem_capacity_bytes", cap))
    except Exception:
        pass
    return max(int(0.72 * cap), 16 << 20)


def _step_vmem_bytes(pb, th, W, pad, in_isz, out_isz, cdt_isz):
    """Approximate live VMEM for one grid step (all buffers + temporaries)."""
    return (2 * pb * th * W * in_isz                     # double-buffered input
            + 2 * pb * th * W * out_isz                  # double-buffered output
            + pb * th * (W + 2 * pad) * in_isz           # xrow scratch
            + pb * th * W * cdt_isz                      # hs scratch
            + pb * (th + 2 * pad) * W * cdt_isz          # win / carry scratch
            + 2 * pb * th * W * 4)                       # f32 hsum/vsum temps


def _choose_tiling(NC, H, W, pad, in_isz, out_isz, cdt_isz, budget,
                   max_in_block=12 << 20, want_plane_steps=4):
    """Pick (planes per block PB, strip height TH)."""
    # Strip heights: the full plane, then divisors of H that are multiples of 8
    # (block rows must be a multiple of 8 or equal to H).
    th_cands = [H] + [t for t in range(8 * (H // 8), 0, -8)
                      if t < H and H % t == 0]
    for th in th_cands:
        if th <= pad:
            continue
        divs = [d for d in range(1, NC + 1)
                if NC % d == 0
                and _step_vmem_bytes(d, th, W, pad, in_isz, out_isz, cdt_isz) <= budget
                and d * th * W * in_isz <= max_in_block]
        if not divs:
            continue
        pb = max(divs)
        # Keep a few plane blocks for megacore when blocks stay >= ~1 MiB;
        # tiny workloads prefer one big block (per-step overhead dominates).
        for d in sorted(divs, reverse=True):
            if NC // d >= min(want_plane_steps, NC) and d * th * W * in_isz >= (1 << 20):
                pb = d
                break
        return pb, th
    return 1, th_cands[-1]


def mean_filter(img, kernel_size=3, *, tile_hint=None):
    """Box blur over an NCHW image, matching kornia.filters.box_blur defaults."""
    k = int(kernel_size)
    if k == 1:
        return img
    assert k % 2 == 1 and k >= 3, "odd kernel sizes only (kornia set is {3,5,7,9})"
    N, C, H, W = img.shape
    pad = (k - 1) // 2
    assert pad < H and pad < W, "reflect padding requires pad < spatial size"

    NC = N * C
    x = img.reshape(NC, H, W)                            # free reshape (no HBM copy)

    in_isz = img.dtype.itemsize
    out_isz = in_isz
    if jnp.issubdtype(img.dtype, jnp.floating) and in_isz < 4:
        cdt = img.dtype                                  # bf16/f16 scratches: half VMEM/traffic
    else:
        cdt = jnp.float32
    cdt_isz = jnp.dtype(cdt).itemsize
    round_out = bool(jnp.issubdtype(img.dtype, jnp.integer))

    budget = _vmem_budget_bytes()
    if tile_hint is None:
        PB, TH = _choose_tiling(NC, H, W, pad, in_isz, out_isz, cdt_isz, budget)
    else:
        PB, TH = tile_hint
    assert NC % PB == 0 and H % TH == 0 and TH > pad, (PB, TH)
    S = H // TH                                          # number of row strips

    est = _step_vmem_bytes(PB, TH, W, pad, in_isz, out_isz, cdt_isz)
    vmem_limit = int(min(budget, max(2 * est, 32 << 20)))

    kernel = functools.partial(_mean_filter_kernel, k=k, TH=TH, W=W, S=S,
                               round_out=round_out)

    cost = pl.CostEstimate(
        flops=int(2 * k * NC * H * W),                   # ~2k adds / pixel (separable)
        transcendentals=0,
        bytes_accessed=int(2 * NC * H * W * in_isz),
    )

    # TODO(synk): for W < 128 the lane dim is underfilled (masked vst); repack
    # so an independent axis (planes) lands on lanes for tiny images.
    # TODO(synk): if profiling shows exposed strip DMAs at step boundaries,
    # add pipeline_mode=pl.Buffered(3) on the input BlockSpec.
    out = pl.pallas_call(
        kernel,
        out_shape=jax.ShapeDtypeStruct((NC, H, W), img.dtype),
        grid_spec=pltpu.PrefetchScalarGridSpec(
            num_scalar_prefetch=0,
            grid=(NC // PB, S + 1),
            in_specs=[pl.BlockSpec((PB, TH, W),
                                   lambda b, s: (b, jnp.minimum(s, S - 1), 0))],
            out_specs=pl.BlockSpec((PB, TH, W),
                                   lambda b, s: (b, jnp.maximum(s - 1, 0), 0)),
            scratch_shapes=[
                pltpu.VMEM((PB, TH, W + 2 * pad), img.dtype),   # xrow (padded strip)
                pltpu.VMEM((PB, TH, W), cdt),                   # hs (horizontal sums)
                pltpu.VMEM((PB, TH + 2 * pad, W), cdt),         # win (carry + window)
            ],
        ),
        compiler_params=pltpu.CompilerParams(
            dimension_semantics=("parallel", "arbitrary"),
            vmem_limit_bytes=vmem_limit,
        ),
        cost_estimate=cost,
    )(x)
    return out.reshape(N, C, H, W)


def _reference_box_blur(img, k):
    """Pure-JAX reference (reflect pad + k*k mean)."""
    pad = (k - 1) // 2
    xp = jnp.pad(img, ((0, 0), (0, 0), (pad, pad), (pad, pad)), mode="reflect")
    N, C, H, W = img.shape
    acc = jnp.zeros((N, C, H, W), dtype=jnp.float32)
    for di in range(k):
        for dj in range(k):
            acc = acc + xp[:, :, di:di + H, dj:dj + W].astype(jnp.float32)
    return (acc / (k * k)).astype(img.dtype)


if __name__ == "__main__":
    # The torch module picks kernel_size randomly from [3, 5, 7, 9]; use fixed
    # sizes here for deterministic, reproducible checks.
    key = jax.random.PRNGKey(0)
    x = jax.random.normal(key, (2, 4, 16, 16), dtype=jnp.float32)   # NCHW

    # 1) default tiling (single strip), k=3
    out = jax.block_until_ready(mean_filter(x, kernel_size=3))
    ref = _reference_box_blur(x, 3)
    assert out.shape == x.shape and out.dtype == x.dtype
    assert float(jnp.max(jnp.abs(out - ref))) < 1e-5

    # 2) forced 2-strip tiling (exercises the carried-halo + boundary paths), k=5
    out = jax.block_until_ready(mean_filter(x, kernel_size=5, tile_hint=(2, 8)))
    ref = _reference_box_blur(x, 5)
    assert float(jnp.max(jnp.abs(out - ref))) < 1e-5

    # 3) 3-strip tiling with a true interior strip, k=3
    x2 = jax.random.normal(jax.random.PRNGKey(0), (1, 2, 24, 16), dtype=jnp.float32)
    out = jax.block_until_ready(mean_filter(x2, kernel_size=3, tile_hint=(1, 8)))
    ref = _reference_box_blur(x2, 3)
    assert float(jnp.max(jnp.abs(out - ref))) < 1e-5

    # 4) bf16 input (dtype-matched scratch path), k=3
    xb = x.astype(jnp.bfloat16)
    out = jax.block_until_ready(mean_filter(xb, kernel_size=3, tile_hint=(4, 8)))
    ref = _reference_box_blur(xb, 3)
    diff = jnp.max(jnp.abs(out.astype(jnp.float32) - ref.astype(jnp.float32)))
    assert float(diff) < 5e-2

    print("KERNEL_OK")
</pallas_src>

<mosaic_0001>
module attributes {stable_mosaic.version = 11 : i64} {
  func.func @_mean_filter_kernel(%arg0: i32, %arg1: i32, %arg2: memref<8x16x16xf32, #tpu.memory_space<vmem>>, %arg3: memref<8x16x16xf32, #tpu.memory_space<vmem>>, %arg4: memref<8x16x18xf32, #tpu.memory_space<vmem>>, %arg5: memref<8x16x16xf32, #tpu.memory_space<vmem>>, %arg6: memref<8x18x16xf32, #tpu.memory_space<vmem>>) attributes {dimension_semantics = [#tpu.dimension_semantics<parallel>, #tpu.dimension_semantics<arbitrary>], iteration_bounds = array<i64: 1, 2>, scalar_prefetch = 0 : i64, scratch_operands = 3 : i64, tpu.core_type = #tpu.core_type<tc>, window_params = [{transform_indices = @transform_0, window_bounds = array<i64: 8, 16, 16>}, {transform_indices = @transform_1, window_bounds = array<i64: 8, 16, 16>}]} {
    %c1_i32 = arith.constant 1 : i32
    %0 = arith.cmpi slt, %arg1, %c1_i32 : i32
    %1 = arith.extui %0 : i1 to i32
    %c0_i32 = arith.constant 0 : i32
    %2 = arith.cmpi ne, %1, %c0_i32 : i32
    scf.if %2 {
      %c0 = arith.constant 0 : index
      %c0_4 = arith.constant 0 : index
      %c0_5 = arith.constant 0 : index
      %9 = vector.load %arg2[%c0, %c0_4, %c0_5] : memref<8x16x16xf32, #tpu.memory_space<vmem>>, vector<8x16x16xf32>
      %c0_6 = arith.constant 0 : index
      %c0_7 = arith.constant 0 : index
      %c1 = arith.constant 1 : index
      %10 = vector.load %arg4[%c0_6, %c0_7, %c1] : memref<8x16x18xf32, #tpu.memory_space<vmem>>, vector<8x16x16xf32>
      tpu.vector_store %arg4[%c0_6, %c0_7, %c1], %9 {strides = array<i32>} : memref<8x16x18xf32, #tpu.memory_space<vmem>>, vector<8x16x16xf32>,
      %c0_8 = arith.constant 0 : index
      %c0_9 = arith.constant 0 : index
      %c1_10 = arith.constant 1 : index
      %11 = vector.load %arg2[%c0_8, %c0_9, %c1_10] : memref<8x16x16xf32, #tpu.memory_space<vmem>>, vector<8x16x1xf32>
      %c0_11 = arith.constant 0 : index
      %c0_12 = arith.constant 0 : index
      %c0_13 = arith.constant 0 : index
      %12 = vector.load %arg4[%c0_11, %c0_12, %c0_13] : memref<8x16x18xf32, #tpu.memory_space<vmem>>, vector<8x16x1xf32>
      tpu.vector_store %arg4[%c0_11, %c0_12, %c0_13], %11 {strides = array<i32>} : memref<8x16x18xf32, #tpu.memory_space<vmem>>, vector<8x16x1xf32>,
      %c0_14 = arith.constant 0 : index
      %c0_15 = arith.constant 0 : index
      %c14 = arith.constant 14 : index
      %13 = vector.load %arg2[%c0_14, %c0_15, %c14] : memref<8x16x16xf32, #tpu.memory_space<vmem>>, vector<8x16x1xf32>
      %c0_16 = arith.constant 0 : index
      %c0_17 = arith.constant 0 : index
      %c17 = arith.constant 17 : index
      %14 = vector.load %arg4[%c0_16, %c0_17, %c17] : memref<8x16x18xf32, #tpu.memory_space<vmem>>, vector<8x16x1xf32>
      tpu.vector_store %arg4[%c0_16, %c0_17, %c17], %13 {strides = array<i32>} : memref<8x16x18xf32, #tpu.memory_space<vmem>>, vector<8x16x1xf32>,
      %c0_18 = arith.constant 0 : index
      %c0_19 = arith.constant 0 : index
      %c0_20 = arith.constant 0 : index
      %15 = vector.load %arg4[%c0_18, %c0_19, %c0_20] : memref<8x16x18xf32, #tpu.memory_space<vmem>>, vector<8x16x16xf32>
      %c0_21 = arith.constant 0 : index
      %c0_22 = arith.constant 0 : index
      %c1_23 = arith.constant 1 : index
      %16 = vector.load %arg4[%c0_21, %c0_22, %c1_23] : memref<8x16x18xf32, #tpu.memory_space<vmem>>, vector<8x16x16xf32>
      %17 = arith.addf %15, %16 : vector<8x16x16xf32>
      %c0_24 = arith.constant 0 : index
      %c0_25 = arith.constant 0 : index
      %c2 = arith.constant 2 : index
      %18 = vector.load %arg4[%c0_24, %c0_25, %c2] : memref<8x16x18xf32, #tpu.memory_space<vmem>>, vector<8x16x16xf32>
      %19 = arith.addf %17, %18 : vector<8x16x16xf32>
      %c0_26 = arith.constant 0 : index
      %c0_27 = arith.constant 0 : index
      %c0_28 = arith.constant 0 : index
      %20 = vector.load %arg5[%c0_26, %c0_27, %c0_28] : memref<8x16x16xf32, #tpu.memory_space<vmem>>, vector<8x16x16xf32>
      tpu.vector_store %arg5[%c0_26, %c0_27, %c0_28], %19 {strides = array<i32>} : memref<8x16x16xf32, #tpu.memory_space<vmem>>, vector<8x16x16xf32>,
    } else {
    }
    %c1_i32_0 = arith.constant 1 : i32
    %3 = arith.cmpi sge, %arg1, %c1_i32_0 : i32
    %4 = arith.extui %3 : i1 to i32
    %c0_i32_1 = arith.constant 0 : i32
    %5 = arith.cmpi ne, %4, %c0_i32_1 : i32
    scf.if %5 {
      %c1_i32_4 = arith.constant 1 : i32
      %9 = arith.cmpi slt, %arg1, %c1_i32_4 : i32
      %10 = arith.extui %9 : i1 to i32
      %c0_i32_5 = arith.constant 0 : i32
      %11 = arith.cmpi ne, %10, %c0_i32_5 : i32
      scf.if %11 {
        %c0_17 = arith.constant 0 : index
        %c0_18 = arith.constant 0 : index
        %c0_19 = arith.constant 0 : index
        %23 = vector.load %arg5[%c0_17, %c0_18, %c0_19] : memref<8x16x16xf32, #tpu.memory_space<vmem>>, vector<8x1x16xf32>
        %c0_20 = arith.constant 0 : index
        %c17 = arith.constant 17 : index
        %c0_21 = arith.constant 0 : index
        %24 = vector.load %arg6[%c0_20, %c17, %c0_21] : memref<8x18x16xf32, #tpu.memory_space<vmem>>, vector<8x1x16xf32>
        tpu.vector_store %arg6[%c0_20, %c17, %c0_21], %23 {strides = array<i32>} : memref<8x18x16xf32, #tpu.memory_space<vmem>>, vector<8x1x16xf32>,
      } else {
      }
      %c1_i32_6 = arith.constant 1 : i32
      %12 = arith.cmpi eq, %arg1, %c1_i32_6 : i32
      %13 = arith.extui %12 : i1 to i32
      %c0_i32_7 = arith.constant 0 : i32
      %14 = arith.cmpi ne, %13, %c0_i32_7 : i32
      scf.if %14 {
        %c0_17 = arith.constant 0 : index
        %c15 = arith.constant 15 : index
        %c0_18 = arith.constant 0 : index
        %23 = vector.load %arg6[%c0_17, %c15, %c0_18] : memref<8x18x16xf32, #tpu.memory_space<vmem>>, vector<8x1x16xf32>
        %c0_19 = arith.constant 0 : index
        %c17 = arith.constant 17 : index
        %c0_20 = arith.constant 0 : index
        %24 = vector.load %arg6[%c0_19, %c17, %c0_20] : memref<8x18x16xf32, #tpu.memory_space<vmem>>, vector<8x1x16xf32>
        tpu.vector_store %arg6[%c0_19, %c17, %c0_20], %23 {strides = array<i32>} : memref<8x18x16xf32, #tpu.memory_space<vmem>>, vector<8x1x16xf32>,
      } else {
      }
      %c0 = arith.constant 0 : index
      %c0_8 = arith.constant 0 : index
      %c0_9 = arith.constant 0 : index
      %15 = vector.load %arg6[%c0, %c0_8, %c0_9] : memref<8x18x16xf32, #tpu.memory_space<vmem>>, vector<8x16x16xf32>
      %c0_10 = arith.constant 0 : index
      %c1 = arith.constant 1 : index
      %c0_11 = arith.constant 0 : index
      %16 = vector.load %arg6[%c0_10, %c1, %c0_11] : memref<8x18x16xf32, #tpu.memory_space<vmem>>, vector<8x16x16xf32>
      %17 = arith.addf %15, %16 : vector<8x16x16xf32>
      %c0_12 = arith.constant 0 : index
      %c2 = arith.constant 2 : index
      %c0_13 = arith.constant 0 : index
      %18 = vector.load %arg6[%c0_12, %c2, %c0_13] : memref<8x18x16xf32, #tpu.memory_space<vmem>>, vector<8x16x16xf32>
      %19 = arith.addf %17, %18 : vector<8x16x16xf32>
      %cst = arith.constant 0.111111112 : f32
      %20 = vector.broadcast %cst : f32 to vector<8x16x16xf32>
      %21 = arith.mulf %19, %20 : vector<8x16x16xf32>
      %c0_14 = arith.constant 0 : index
      %c0_15 = arith.constant 0 : index
      %c0_16 = arith.constant 0 : index
      %22 = vector.load %arg3[%c0_14, %c0_15, %c0_16] : memref<8x16x16xf32, #tpu.memory_space<vmem>>, vector<8x16x16xf32>
      tpu.vector_store %arg3[%c0_14, %c0_15, %c0_16], %21 {strides = array<i32>} : memref<8x16x16xf32, #tpu.memory_space<vmem>>, vector<8x16x16xf32>,
    } else {
    }
    %c1_i32_2 = arith.constant 1 : i32
    %6 = arith.cmpi slt, %arg1, %c1_i32_2 : i32
    %7 = arith.extui %6 : i1 to i32
    %c0_i32_3 = arith.constant 0 : i32
    %8 = arith.cmpi ne, %7, %c0_i32_3 : i32
    scf.if %8 {
      %c0_i32_4 = arith.constant 0 : i32
      %9 = arith.cmpi eq, %arg1, %c0_i32_4 : i32
      %10 = arith.extui %9 : i1 to i32
      %c0_i32_5 = arith.constant 0 : i32
      %11 = arith.cmpi ne, %10, %c0_i32_5 : i32
      scf.if %11 {
        %c0 = arith.constant 0 : index
        %c0_8 = arith.constant 0 : index
        %c0_9 = arith.constant 0 : index
        %15 = vector.load %arg5[%c0, %c0_8, %c0_9] : memref<8x16x16xf32, #tpu.memory_space<vmem>>, vector<8x16x16xf32>
        %c0_10 = arith.constant 0 : index
        %c1 = arith.constant 1 : index
        %c0_11 = arith.constant 0 : index
        %16 = vector.load %arg6[%c0_10, %c1, %c0_11] : memref<8x18x16xf32, #tpu.memory_space<vmem>>, vector<8x16x16xf32>
        tpu.vector_store %arg6[%c0_10, %c1, %c0_11], %15 {strides = array<i32>} : memref<8x18x16xf32, #tpu.memory_space<vmem>>, vector<8x16x16xf32>,
        %c0_12 = arith.constant 0 : index
        %c1_13 = arith.constant 1 : index
        %c0_14 = arith.constant 0 : index
        %17 = vector.load %arg5[%c0_12, %c1_13, %c0_14] : memref<8x16x16xf32, #tpu.memory_space<vmem>>, vector<8x1x16xf32>
        %c0_15 = arith.constant 0 : index
        %c0_16 = arith.constant 0 : index
        %c0_17 = arith.constant 0 : index
        %18 = vector.load %arg6[%c0_15, %c0_16, %c0_17] : memref<8x18x16xf32, #tpu.memory_space<vmem>>, vector<8x1x16xf32>
        tpu.vector_store %arg6[%c0_15, %c0_16, %c0_17], %17 {strides = array<i32>} : memref<8x18x16xf32, #tpu.memory_space<vmem>>, vector<8x1x16xf32>,
      } else {
      }
      %c0_i32_6 = arith.constant 0 : i32
      %12 = arith.cmpi sgt, %arg1, %c0_i32_6 : i32
      %13 = arith.extui %12 : i1 to i32
      %c0_i32_7 = arith.constant 0 : i32
      %14 = arith.cmpi ne, %13, %c0_i32_7 : i32
      scf.if %14 {
        %c0 = arith.constant 0 : index
        %c16 = arith.constant 16 : index
        %c0_8 = arith.constant 0 : index
        %15 = vector.load %arg6[%c0, %c16, %c0_8] : memref<8x18x16xf32, #tpu.memory_space<vmem>>, vector<8x1x16xf32>
        %c0_9 = arith.constant 0 : index
        %c0_10 = arith.constant 0 : index
        %c0_11 = arith.constant 0 : index
        %16 = vector.load %arg6[%c0_9, %c0_10, %c0_11] : memref<8x18x16xf32, #tpu.memory_space<vmem>>, vector<8x1x16xf32>
        tpu.vector_store %arg6[%c0_9, %c0_10, %c0_11], %15 {strides = array<i32>} : memref<8x18x16xf32, #tpu.memory_space<vmem>>, vector<8x1x16xf32>,
        %c0_12 = arith.constant 0 : index
        %c0_13 = arith.constant 0 : index
        %c0_14 = arith.constant 0 : index
        %17 = vector.load %arg5[%c0_12, %c0_13, %c0_14] : memref<8x16x16xf32, #tpu.memory_space<vmem>>, vector<8x16x16xf32>
        %c0_15 = arith.constant 0 : index
        %c1 = arith.constant 1 : index
        %c0_16 = arith.constant 0 : index
        %18 = vector.load %arg6[%c0_15, %c1, %c0_16] : memref<8x18x16xf32, #tpu.memory_space<vmem>>, vector<8x16x16xf32>
        tpu.vector_store %arg6[%c0_15, %c1, %c0_16], %17 {strides = array<i32>} : memref<8x18x16xf32, #tpu.memory_space<vmem>>, vector<8x16x16xf32>,
      } else {
      }
    } else {
    }
    return
  }
  func.func @transform_0(%arg0: i32, %arg1: i32) -> (i32, i32, i32) {
    %c0_i32 = arith.constant 0 : i32
    %0 = arith.minsi %arg1, %c0_i32 : i32
    %c0_i32_0 = arith.constant 0 : i32
    %c0_i32_1 = arith.constant 0 : i32
    return %arg0, %0, %c0_i32_0 : i32, i32, i32
  }
  func.func @transform_1(%arg0: i32, %arg1: i32) -> (i32, i32, i32) {
    %c1_i32 = arith.constant 1 : i32
    %0 = arith.subi %arg1, %c1_i32 : i32
    %c0_i32 = arith.constant 0 : i32
    %1 = arith.maxsi %0, %c0_i32 : i32
    %c0_i32_0 = arith.constant 0 : i32
    %c0_i32_1 = arith.constant 0 : i32
    return %arg0, %1, %c0_i32_0 : i32, i32, i32
  }
}

</mosaic_0001>

<bundles_post_ra>
// kernel: tpu_custom_call.1
= control target key start
LH: loop header
LB: loop body
LE: loop exit
PB: predicated region body
PF: predicated region fallthrough
CT: control target
= control target key end

     0   :  { %6 = vsyncpa [#allocation6], 0  ;;  %s1736_s0 = inlined_call_operand.hbm [shape: f32[8,16,16], index: 0, kind: input, shape index: {}]   ;;  %s1737_s1 = inlined_call_operand.hbm [shape: f32[8,16,16], index: 1, kind: output, shape index: {}]  }
   0x1   :  { %8 = vsyncpa [#allocation6 + $0x1], 0 }
   0x2   :  { %9 = vsyncpa [#allocation7], 0 }
   0x3   :  { %11 = vsyncpa [#allocation7 + $0x1], 0  ;;  %s1296_s6 = smov 0   ;;  %s1298_s7 = smov 0  }
   0x4   :  { %s1300_s8 = smov 0   ;;  %s1302_s9 = smov 0  }
   0x5   :  { %s1304_s10 = smov 0   ;;  %s1306_s11 = smov 0  }
   0x6   :  { %s1308_s12 = smov 0  }
   0x7 LB: > { %s1023_s13 = sadd.s32 4294967295, %s1274_s12   ;;  %s1024_s14 = sadd.s32 4294967294, %s1274_s12   ;;  %s1274_s12 = sphi %s1308_s12, %s17_s12   ;;  %s1270_s11 = sphi %s1306_s11, %s1754_s11   ;;  %s1266_s10 = sphi %s1304_s10, %s1753_s10   ;;  %s1262_s9 = sphi %s1302_s9, %s1726_s9   ;;  %s1258_s8 = sphi %s1300_s8, %s1752_s8   ;;  %s1254_s7 = sphi %s1298_s7, %s1721_s7   ;;  %s1250_s6 = sphi %s1296_s6, %s1751_s6  }
   0x8   : > { %s26_s15 = sadd.s32 1, %s1270_s11  ;;  %p1246_p1 = scmp.ne.s32.totalorder %s1262_s9, 0 }
   0x9   : > { %p27_p0 = scmp.ge.s32.totalorder %s26_s15, 2  ;;  %p50_p2 = scmp.eq.s32.totalorder %s1274_s12, 0 }
   0xa   : > { %p55_p3 = scmp.ne.s32.totalorder %s1262_s9, %s1258_s8  ;;  %p56_p5 = scmp.eq.s32.totalorder %s1023_s13, 0 }
   0xb   : > { %s1756_s15 = smov (%p27_p0, %s26_s15), 0  ;;  %p1337_p4 = por %p1246_p1, %p50_p2 }
   0xc   : > { %p1341_p6 = por %p56_p5, %p55_p3  ;;  %p1247_p7 = scmp.ne.s32.totalorder %s1254_s7, 0 }
   0xd   : > { %p87_p8 = scmp.eq.s32.totalorder %s1023_s13, 1  ;;  %p92_p10 = scmp.ne.s32.totalorder %s1254_s7, %s1250_s6 }
   0xe   : > { %s1742_s17 = scalar_select %p1341_p6, 1, 0 }
   0xf   : > { %p1346_p9 = por %p1247_p7, %p87_p8  ;;  %p93_p11 = scmp.eq.s32.totalorder %s1024_s14, 1 }
  0x10   : > { %p1062_p0 = scmp.lt.s32.totalorder %s1274_s12, 2  ;;  %s1276_s20 = smov [#allocation5]  }
  0x11   : > { %s1743_s18 = scalar_select %p1346_p9, 1, 0 }
  0x12   : > { %p1353_p13 = por %p93_p11, %p92_p10  ;;  %s129_s21 = sshll.u32 %s1276_s20, 4  ;;  %s130_s21 = int_to_ptr.vmem [resolvable:$true] %s129_s21 }
  0x13   : > { %p1360_p1 = pnand %p1062_p0, %p1337_p4  ;;  %s1144_s25 = scalar_lea.hbm %s1736_s0, 2048 }
  0x14   : > { %s1744_s19 = scalar_select %p1353_p13, 1, 0 }
  0x15   : > { %s1745_s22 = scalar_select %p1360_p1, 1, 0 }
  0x16   : > { %p1145_p2 = scmp.ne.s32.totalorder %s1736_s0, %s1144_s25  ;;  %p1146_p3 = pneg %p1360_p1 }
  0x17   : > { %p1151_p8 = scmp.lt.u32.totalorder %s1144_s25, %s1144_s25  ;;  %p1153_p4 = scmp.lt.u32.totalorder %s1144_s25, %s1736_s0 }
  0x18   : > { %p1147_p5 = pnand %p1146_p3, %p1145_p2 }
  0x19   : > { %p1154_p10 = por %p1153_p4, %p1151_p8 }
  0x1a   : > { %p1148_p7 = pneg %p1147_p5 }
  0x1c   : > { %p1155_p11 = pnand %p1154_p10, %p1148_p7 }
  0x1e   : > { %1158 = shalt.err (!%p1155_p11)
}
  0x1f   : > { %s1159_s30 = scalar_lea.vmem %s130_s21, 2048  ;;  %s1166_s2 = scalar_lea.vmem %s130_s21, 4096 }
  0x20   : > { %p1160_p0 = scmp.ne.s32.totalorder %s130_s21, %s1159_s30  ;;  %p1167_p9 = scmp.lt.s32.totalorder %s130_s21, %s130_s21 }
  0x21   : > { %p1168_p6 = scmp.lt.s32.totalorder %s1166_s2, %s1159_s30 }
  0x22   : > { %p1162_p12 = pnand %p1160_p0, %p1146_p3 }
  0x23   : > { %p1169_p1 = por %p1168_p6, %p1167_p9 }
  0x24   : > { %p1163_p13 = pneg %p1162_p12 }
  0x26   : > { %p1170_p2 = pnand %p1169_p1, %p1163_p13 }
  0x28   : > { %1173 = shalt.err (!%p1170_p2)
}
  0x29   : > { %s1277_s3 = smov 128   ;;  %s1278_s4 = smov 8  }
  0x2a   : > { %p1746_p5 = scmp.ne.s32.totalorder %s1745_s22, 0  ;;  %p1032_p7 = scmp.ge.s32.totalorder %s1274_s12, 1 }
  0x2b   : > { %p137_p8 = scmp.lt.s32.totalorder %s1274_s12, 3 }
  0x2c   : > { %1057 = dma.hbm_to_vmem [thread:$0]  (!%p1746_p5), %s1736_s0, 2048, %s130_s21, [#allocation6], %s1277_s3, %s1277_s3, %s1278_s4  }
  0x2d   : > { %p138_p3 = pnand %p1032_p7, %p137_p8 }
  0x2e   : > { %s143_s13 = sand.u32 (!%p138_p3), 1, %s1262_s9   ;;  %p1747_p6 = scmp.ne.s32.totalorder (!%p138_p3), %s1742_s17, 0 }
  0x2f   : > { %141 = sbr.rel (%p138_p3) target bundleno = 538 (0x21a), region = 24  ;;  %s1033_s14 = sshll.u32 (!%p138_p3), %s143_s13, 7 }
  0x30   : > { %s144_s16 = scalar_lea.sflag (!%p138_p3), [#allocation6], %s143_s13  ;;  %s1383_s20 = scalar_lea.vmem (!%p138_p3), [#allocation5], %s1033_s14 }
  0x36   : > { %1239 = dma.done.wait (%p1747_p6), %s144_s16, 2048  }
  0x37   : > { %1241 = vsyncadd (%p1747_p6), %s144_s16, 4294965248  ;;  %s163_s22 = sand.u32 1, %s1254_s7   ;;  %p1035_p9 = scmp.ge.s32.totalorder %s1266_s10, 1 }
  0x38   : > { %s1034_s21 = sshll.u32 %s163_s22, 7  ;;  %v181_v0 = vld [vmem:[%s1383_s20 + $0x10] sm:$0xff] (!%p1035_p9)  ;;  %v179_v1 = vld [vmem:[%s1383_s20] sm:$0xff] (!%p1035_p9)  ;;  %s1279_s17 = smov (!%p1035_p9), 1   ;;  %v182_v2 = vld [vmem:[%s1383_s20 + $0x18] sm:$0xff] (!%p1035_p9)  ;;  %vm259_vm0 = vcmask (!%p1035_p9), 138248  }
  0x39   : > { %s1392_s23 = scalar_lea.vmem [#allocation8], %s1034_s21  ;;  %178 = sbr.rel (%p1035_p9) target bundleno = 422 (0x1a6), region = 32  ;;  %215 = vrot.lane.b32.xlu1 (!%p1035_p9), %v181_v0, %s1279_s17  ;;  %211 = vrot.lane.b32.xlu0 (!%p1035_p9), %v179_v1, %s1279_s17  ;;  %v180_v3 = vld [vmem:[%s1383_s20 + $0x8] sm:$0xff] (!%p1035_p9)  ;;  %v183_v5 = vld [vmem:[%s1383_s20 + $0x20] sm:$0xff] (!%p1035_p9)  ;;  %vm356_vm1 = vcmask (!%p1035_p9), 7168   ;;  %vm453_vm2 = vcmask (!%p1035_p9), 146568  }
  0x3a   : > { %v184_v4 = vld [vmem:[%s1383_s20 + $0x28] sm:$0xff] (!%p1035_p9)  ;;  %v186_v6 = vld [vmem:[%s1383_s20 + $0x38] sm:$0xff] (!%p1035_p9)  ;;  %v185_v7 = vld [vmem:[%s1383_s20 + $0x30] sm:$0xff] (!%p1035_p9)  ;;  %s1280_s24 = smov (!%p1035_p9), 127   ;;  %s1281_s25 = smov (!%p1035_p9), 3   ;;  %vm630_vm3 = vcmask (!%p1035_p9), 130048  }
  0x3b   : > { %v188_v8 = vld [vmem:[%s1383_s20 + $0x48] sm:$0xff] (!%p1035_p9)  ;;  %v187_v9 = vld [vmem:[%s1383_s20 + $0x40] sm:$0xff] (!%p1035_p9)  ;;  %v190_v10 = vld [vmem:[%s1383_s20 + $0x58] sm:$0xff] (!%p1035_p9)  ;;  %s1282_s26 = smov (!%p1035_p9), 126  }
  0x3c   : > { %v189_v11 = vld [vmem:[%s1383_s20 + $0x50] sm:$0xff] (!%p1035_p9)  ;;  %v192_v12 = vld [vmem:[%s1383_s20 + $0x68] sm:$0xff] (!%p1035_p9)  ;;  %v191_v13 = vld [vmem:[%s1383_s20 + $0x60] sm:$0xff] (!%p1035_p9) }
  0x3d   : > { %217 = vrot.lane.b32.xlu1 (!%p1035_p9), %v182_v2, %s1279_s17  ;;  %213 = vrot.lane.b32.xlu0 (!%p1035_p9), %v180_v3, %s1279_s17  ;;  %v194_v14 = vld [vmem:[%s1383_s20 + $0x78] sm:$0xff] (!%p1035_p9)  ;;  %v193_v15 = vld [vmem:[%s1383_s20 + $0x70] sm:$0xff] (!%p1035_p9) }
  0x41   : > { %221 = vrot.lane.b32.xlu1 %v184_v4, %s1279_s17  ;;  %219 = vrot.lane.b32.xlu0 %v183_v5, %s1279_s17 }
  0x45   : > { %225 = vrot.lane.b32.xlu1 %v186_v6, %s1279_s17  ;;  %223 = vrot.lane.b32.xlu0 %v185_v7, %s1279_s17 }
  0x49   : > { %229 = vrot.lane.b32.xlu1 %v188_v8, %s1279_s17  ;;  %227 = vrot.lane.b32.xlu0 %v187_v9, %s1279_s17 }
  0x4d   : > { %233 = vrot.lane.b32.xlu1 %v190_v10, %s1279_s17  ;;  %231 = vrot.lane.b32.xlu0 %v189_v11, %s1279_s17 }
  0x51   : > { %237 = vrot.lane.b32.xlu1 %v192_v12, %s1279_s17  ;;  %235 = vrot.lane.b32.xlu0 %v191_v13, %s1279_s17 }
  0x55   : > { %241 = vrot.lane.b32.xlu1 %v194_v14, %s1279_s17  ;;  %239 = vrot.lane.b32.xlu0 %v193_v15, %s1279_s17 }
  0x59   : > { %310 = vrot.lane.b32.xlu1 %v180_v3, %s1280_s24  ;;  %308 = vrot.lane.b32.xlu0 %v179_v1, %s1280_s24 }
  0x5d   : > { %314 = vrot.lane.b32.xlu1 %v182_v2, %s1280_s24  ;;  %312 = vrot.lane.b32.xlu0 %v181_v0, %s1280_s24 }
  0x61   : > { %318 = vrot.lane.b32.xlu1 %v184_v4, %s1280_s24  ;;  %316 = vrot.lane.b32.xlu0 %v183_v5, %s1280_s24 }
  0x65   : > { %322 = vrot.lane.b32.xlu1 %v186_v6, %s1280_s24  ;;  %320 = vrot.lane.b32.xlu0 %v185_v7, %s1280_s24 }
  0x69   : > { %326 = vrot.lane.b32.xlu1 %v188_v8, %s1280_s24  ;;  %324 = vrot.lane.b32.xlu0 %v187_v9, %s1280_s24 }
  0x6d   : > { %330 = vrot.lane.b32.xlu1 %v190_v10, %s1280_s24  ;;  %328 = vrot.lane.b32.xlu0 %v189_v11, %s1280_s24 }
  0x71   : > { %334 = vrot.lane.b32.xlu1 %v192_v12, %s1280_s24  ;;  %332 = vrot.lane.b32.xlu0 %v191_v13, %s1280_s24 }
  0x75   : > { %338 = vrot.lane.b32.xlu1 %v194_v14, %s1280_s24  ;;  %336 = vrot.lane.b32.xlu0 %v193_v15, %s1280_s24 }
  0x79   : > { %407 = vrot.lane.b32.xlu1 %v180_v3, %s1281_s25  ;;  %405 = vrot.lane.b32.xlu0 %v179_v1, %s1281_s25 }
  0x7d   : > { %411 = vrot.lane.b32.xlu1 %v182_v2, %s1281_s25  ;;  %409 = vrot.lane.b32.xlu0 %v181_v0, %s1281_s25 }
  0x81   : > { %415 = vrot.lane.b32.xlu1 %v184_v4, %s1281_s25  ;;  %413 = vrot.lane.b32.xlu0 %v183_v5, %s1281_s25 }
  0x85   : > { %419 = vrot.lane.b32.xlu1 %v186_v6, %s1281_s25  ;;  %417 = vrot.lane.b32.xlu0 %v185_v7, %s1281_s25 }
  0x89   : > { %423 = vrot.lane.b32.xlu1 %v188_v8, %s1281_s25  ;;  %421 = vrot.lane.b32.xlu0 %v187_v9, %s1281_s25 }
  0x8d   : > { %427 = vrot.lane.b32.xlu1 %v190_v10, %s1281_s25  ;;  %425 = vrot.lane.b32.xlu0 %v189_v11, %s1281_s25 }
  0x91   : > { %431 = vrot.lane.b32.xlu1 %v192_v12, %s1281_s25  ;;  %429 = vrot.lane.b32.xlu0 %v191_v13, %s1281_s25 }
  0x95   : > { %435 = vrot.lane.b32.xlu1 %v194_v14, %s1281_s25  ;;  %433 = vrot.lane.b32.xlu0 %v193_v15, %s1281_s25 }
  0xab   : > { %v216_v16 = vpop.permute.xlu1 %215  ;;  %v212_v17 = vpop.permute.xlu0 %211 }
  0xac   : > { %262 = vst.msk [vmem:[#allocation2 + $0x10] sm:$0xff] %vm259_vm0, %v216_v16  ;;  %260 = vst.msk [vmem:[#allocation2] sm:$0xff] %vm259_vm0, %v212_v17 }
  0xaf   : > { %v218_v18 = vpop.permute.xlu1 %217  ;;  %v214_v19 = vpop.permute.xlu0 %213 }
  0xb0   : > { %263 = vst.msk [vmem:[#allocation2 + $0x18] sm:$0xff] %vm259_vm0, %v218_v18  ;;  %261 = vst.msk [vmem:[#allocation2 + $0x8] sm:$0xff] %vm259_vm0, %v214_v19 }
  0xb3   : > { %v222_v20 = vpop.permute.xlu1 %221  ;;  %v220_v21 = vpop.permute.xlu0 %219 }
  0xb4   : > { %265 = vst.msk [vmem:[#allocation2 + $0x28] sm:$0xff] %vm259_vm0, %v222_v20  ;;  %264 = vst.msk [vmem:[#allocation2 + $0x20] sm:$0xff] %vm259_vm0, %v220_v21 }
  0xb7   : > { %v226_v22 = vpop.permute.xlu1 %225  ;;  %v224_v23 = vpop.permute.xlu0 %223 }
  0xb8   : > { %267 = vst.msk [vmem:[#allocation2 + $0x38] sm:$0xff] %vm259_vm0, %v226_v22  ;;  %266 = vst.msk [vmem:[#allocation2 + $0x30] sm:$0xff] %vm259_vm0, %v224_v23 }
  0xbb   : > { %v230_v24 = vpop.permute.xlu1 %229  ;;  %v228_v25 = vpop.permute.xlu0 %227 }
  0xbc   : > { %269 = vst.msk [vmem:[#allocation2 + $0x48] sm:$0xff] %vm259_vm0, %v230_v24  ;;  %268 = vst.msk [vmem:[#allocation2 + $0x40] sm:$0xff] %vm259_vm0, %v228_v25 }
  0xbf   : > { %v234_v26 = vpop.permute.xlu1 %233  ;;  %v232_v27 = vpop.permute.xlu0 %231 }
  0xc0   : > { %271 = vst.msk [vmem:[#allocation2 + $0x58] sm:$0xff] %vm259_vm0, %v234_v26  ;;  %270 = vst.msk [vmem:[#allocation2 + $0x50] sm:$0xff] %vm259_vm0, %v232_v27 }
  0xc3   : > { %v238_v28 = vpop.permute.xlu1 %237  ;;  %v236_v29 = vpop.permute.xlu0 %235 }
  0xc4   : > { %273 = vst.msk [vmem:[#allocation2 + $0x68] sm:$0xff] %vm259_vm0, %v238_v28  ;;  %272 = vst.msk [vmem:[#allocation2 + $0x60] sm:$0xff] %vm259_vm0, %v236_v29 }
  0xc7   : > { %v242_v30 = vpop.permute.xlu1 %241  ;;  %v240_v31 = vpop.permute.xlu0 %239 }
  0xc8   : > { %275 = vst.msk [vmem:[#allocation2 + $0x78] sm:$0xff] %vm259_vm0, %v242_v30  ;;  %274 = vst.msk [vmem:[#allocation2 + $0x70] sm:$0xff] %vm259_vm0, %v240_v31 }
  0xcb   : > { %v311_v32 = vpop.permute.xlu1 %310  ;;  %v309_v33 = vpop.permute.xlu0 %308 }
  0xcc   : > { %358 = vst.msk [vmem:[#allocation2 + $0x8] sm:$0xff] %vm356_vm1, %v311_v32  ;;  %357 = vst.msk [vmem:[#allocation2] sm:$0xff] %vm356_vm1, %v309_v33 }
  0xcf   : > { %v315_v34 = vpop.permute.xlu1 %314  ;;  %v313_v35 = vpop.permute.xlu0 %312 }
  0xd0   : > { %360 = vst.msk [vmem:[#allocation2 + $0x18] sm:$0xff] %vm356_vm1, %v315_v34  ;;  %359 = vst.msk [vmem:[#allocation2 + $0x10] sm:$0xff] %vm356_vm1, %v313_v35 }
  0xd3   : > { %v319_v36 = vpop.permute.xlu1 %318  ;;  %v317_v37 = vpop.permute.xlu0 %316 }
  0xd4   : > { %362 = vst.msk [vmem:[#allocation2 + $0x28] sm:$0xff] %vm356_vm1, %v319_v36  ;;  %361 = vst.msk [vmem:[#allocation2 + $0x20] sm:$0xff] %vm356_vm1, %v317_v37 }
  0xd7   : > { %v323_v38 = vpop.permute.xlu1 %322  ;;  %v321_v39 = vpop.permute.xlu0 %320 }
  0xd8   : > { %364 = vst.msk [vmem:[#allocation2 + $0x38] sm:$0xff] %vm356_vm1, %v323_v38  ;;  %363 = vst.msk [vmem:[#allocation2 + $0x30] sm:$0xff] %vm356_vm1, %v321_v39 }
  0xdb   : > { %v327_v40 = vpop.permute.xlu1 %326  ;;  %v325_v41 = vpop.permute.xlu0 %324 }
  0xdc   : > { %366 = vst.msk [vmem:[#allocation2 + $0x48] sm:$0xff] %vm356_vm1, %v327_v40  ;;  %365 = vst.msk [vmem:[#allocation2 + $0x40] sm:$0xff] %vm356_vm1, %v325_v41 }
  0xdf   : > { %v331_v42 = vpop.permute.xlu1 %330  ;;  %v329_v43 = vpop.permute.xlu0 %328 }
  0xe0   : > { %368 = vst.msk [vmem:[#allocation2 + $0x58] sm:$0xff] %vm356_vm1, %v331_v42  ;;  %367 = vst.msk [vmem:[#allocation2 + $0x50] sm:$0xff] %vm356_vm1, %v329_v43 }
  0xe3   : > { %v335_v44 = vpop.permute.xlu1 %334  ;;  %v333_v45 = vpop.permute.xlu0 %332 }
  0xe4   : > { %370 = vst.msk [vmem:[#allocation2 + $0x68] sm:$0xff] %vm356_vm1, %v335_v44  ;;  %369 = vst.msk [vmem:[#allocation2 + $0x60] sm:$0xff] %vm356_vm1, %v333_v45 }
  0xe7   : > { %v339_v46 = vpop.permute.xlu1 %338  ;;  %v337_v47 = vpop.permute.xlu0 %336 }
  0xe8   : > { %372 = vst.msk [vmem:[#allocation2 + $0x78] sm:$0xff] %vm356_vm1, %v339_v46  ;;  %371 = vst.msk [vmem:[#allocation2 + $0x70] sm:$0xff] %vm356_vm1, %v337_v47 }
  0xeb   : > { %v408_v48 = vpop.permute.xlu1 %407  ;;  %v406_v49 = vpop.permute.xlu0 %405 }
  0xec   : > { %455 = vst.msk [vmem:[#allocation2 + $0x8] sm:$0xff] %vm453_vm2, %v408_v48  ;;  %454 = vst.msk [vmem:[#allocation2] sm:$0xff] %vm453_vm2, %v406_v49 }
  0xef   : > { %v412_v50 = vpop.permute.xlu1 %411  ;;  %v410_v51 = vpop.permute.xlu0 %409 }
  0xf0   : > { %457 = vst.msk [vmem:[#allocation2 + $0x18] sm:$0xff] %vm453_vm2, %v412_v50  ;;  %456 = vst.msk [vmem:[#allocation2 + $0x10] sm:$0xff] %vm453_vm2, %v410_v51 }
  0xf3   : > { %v416_v52 = vpop.permute.xlu1 %415  ;;  %v414_v53 = vpop.permute.xlu0 %413  ;;  %v1465_v54 = vld [vmem:[#allocation2 + $0x8] sm:$0xff]  ;;  %v1467_v55 = vld [vmem:[#allocation2] sm:$0xff] }
  0xf4   : > { %459 = vst.msk [vmem:[#allocation2 + $0x28] sm:$0xff] %vm453_vm2, %v416_v52  ;;  %458 = vst.msk [vmem:[#allocation2 + $0x20] sm:$0xff] %vm453_vm2, %v414_v53  ;;  %504 = vrot.lane.b32.xlu1 %v1465_v54, %s1280_s24  ;;  %502 = vrot.lane.b32.xlu0 %v1467_v55, %s1280_s24 }
  0xf7   : > { %v420_v56 = vpop.permute.xlu1 %419  ;;  %v418_v57 = vpop.permute.xlu0 %417  ;;  %v1475_v58 = vld [vmem:[#allocation2 + $0x18] sm:$0xff]  ;;  %v1477_v59 = vld [vmem:[#allocation2 + $0x10] sm:$0xff] }
  0xf8   : > { %461 = vst.msk [vmem:[#allocation2 + $0x38] sm:$0xff] %vm453_vm2, %v420_v56  ;;  %460 = vst.msk [vmem:[#allocation2 + $0x30] sm:$0xff] %vm453_vm2, %v418_v57  ;;  %508 = vrot.lane.b32.xlu1 %v1475_v58, %s1280_s24  ;;  %506 = vrot.lane.b32.xlu0 %v1477_v59, %s1280_s24 }
  0xfb   : > { %v424_v60 = vpop.permute.xlu1 %423  ;;  %v422_v61 = vpop.permute.xlu0 %421  ;;  %v1485_v62 = vld [vmem:[#allocation2 + $0x28] sm:$0xff]  ;;  %v1487_v63 = vld [vmem:[#allocation2 + $0x20] sm:$0xff] }
  0xfc   : > { %463 = vst.msk [vmem:[#allocation2 + $0x48] sm:$0xff] %vm453_vm2, %v424_v60  ;;  %462 = vst.msk [vmem:[#allocation2 + $0x40] sm:$0xff] %vm453_vm2, %v422_v61  ;;  %512 = vrot.lane.b32.xlu1 %v1485_v62, %s1280_s24  ;;  %510 = vrot.lane.b32.xlu0 %v1487_v63, %s1280_s24 }
  0xff   : > { %v428_v0 = vpop.permute.xlu1 %427  ;;  %v426_v1 = vpop.permute.xlu0 %425  ;;  %v1495_v2 = vld [vmem:[#allocation2 + $0x38] sm:$0xff]  ;;  %v1497_v3 = vld [vmem:[#allocation2 + $0x30] sm:$0xff] }
 0x100   : > { %465 = vst.msk [vmem:[#allocation2 + $0x58] sm:$0xff] %vm453_vm2, %v428_v0  ;;  %464 = vst.msk [vmem:[#allocation2 + $0x50] sm:$0xff] %vm453_vm2, %v426_v1  ;;  %516 = vrot.lane.b32.xlu1 %v1495_v2, %s1280_s24  ;;  %514 = vrot.lane.b32.xlu0 %v1497_v3, %s1280_s24 }
 0x103   : > { %v432_v4 = vpop.permute.xlu1 %431  ;;  %v430_v5 = vpop.permute.xlu0 %429  ;;  %v1505_v6 = vld [vmem:[#allocation2 + $0x48] sm:$0xff]  ;;  %v1507_v7 = vld [vmem:[#allocation2 + $0x40] sm:$0xff] }
 0x104   : > { %467 = vst.msk [vmem:[#allocation2 + $0x68] sm:$0xff] %vm453_vm2, %v432_v4  ;;  %466 = vst.msk [vmem:[#allocation2 + $0x60] sm:$0xff] %vm453_vm2, %v430_v5  ;;  %520 = vrot.lane.b32.xlu1 %v1505_v6, %s1280_s24  ;;  %518 = vrot.lane.b32.xlu0 %v1507_v7, %s1280_s24 }
 0x107   : > { %v436_v8 = vpop.permute.xlu1 %435  ;;  %v434_v9 = vpop.permute.xlu0 %433  ;;  %v1515_v10 = vld [vmem:[#allocation2 + $0x58] sm:$0xff]  ;;  %v1517_v11 = vld [vmem:[#allocation2 + $0x50] sm:$0xff] }
 0x108   : > { %469 = vst.msk [vmem:[#allocation2 + $0x78] sm:$0xff] %vm453_vm2, %v436_v8  ;;  %468 = vst.msk [vmem:[#allocation2 + $0x70] sm:$0xff] %vm453_vm2, %v434_v9  ;;  %524 = vrot.lane.b32.xlu1 %v1515_v10, %s1280_s24  ;;  %522 = vrot.lane.b32.xlu0 %v1517_v11, %s1280_s24 }
 0x10b   : > { %v1525_v12 = vld [vmem:[#allocation2 + $0x68] sm:$0xff]  ;;  %v1527_v13 = vld [vmem:[#allocation2 + $0x60] sm:$0xff] }
 0x10c   : > { %528 = vrot.lane.b32.xlu1 %v1525_v12, %s1280_s24  ;;  %526 = vrot.lane.b32.xlu0 %v1527_v13, %s1280_s24 }
 0x10f   : > { %v1533_v14 = vld [vmem:[#allocation2 + $0x78] sm:$0xff]  ;;  %v1535_v15 = vld [vmem:[#allocation2 + $0x70] sm:$0xff] }
 0x110   : > { %532 = vrot.lane.b32.xlu1 %v1533_v14, %s1280_s24  ;;  %530 = vrot.lane.b32.xlu0 %v1535_v15, %s1280_s24 }
 0x114   : > { %568 = vrot.lane.b32.xlu1 %v1465_v54, %s1282_s26  ;;  %566 = vrot.lane.b32.xlu0 %v1467_v55, %s1282_s26 }
 0x118   : > { %572 = vrot.lane.b32.xlu1 %v1475_v58, %s1282_s26  ;;  %570 = vrot.lane.b32.xlu0 %v1477_v59, %s1282_s26 }
 0x11c   : > { %576 = vrot.lane.b32.xlu1 %v1485_v62, %s1282_s26  ;;  %574 = vrot.lane.b32.xlu0 %v1487_v63, %s1282_s26 }
 0x120   : > { %580 = vrot.lane.b32.xlu1 %v1495_v2, %s1282_s26  ;;  %578 = vrot.lane.b32.xlu0 %v1497_v3, %s1282_s26 }
 0x124   : > { %584 = vrot.lane.b32.xlu1 %v1505_v6, %s1282_s26  ;;  %582 = vrot.lane.b32.xlu0 %v1507_v7, %s1282_s26 }
 0x128   : > { %588 = vrot.lane.b32.xlu1 %v1515_v10, %s1282_s26  ;;  %586 = vrot.lane.b32.xlu0 %v1517_v11, %s1282_s26 }
 0x12c   : > { %592 = vrot.lane.b32.xlu1 %v1525_v12, %s1282_s26  ;;  %590 = vrot.lane.b32.xlu0 %v1527_v13, %s1282_s26 }
 0x130   : > { %596 = vrot.lane.b32.xlu1 %v1533_v14, %s1282_s26  ;;  %594 = vrot.lane.b32.xlu0 %v1535_v15, %s1282_s26 }
 0x166   : > { %v505_v16 = vpop.permute.xlu1 %504  ;;  %v503_v17 = vpop.permute.xlu0 %502 }
 0x167   : > { %v551_v32 = vadd.f32 %v505_v16, %v1465_v54  ;;  %v550_v33 = vadd.f32 %v503_v17, %v1467_v55 }
 0x16a   : > { %v509_v18 = vpop.permute.xlu1 %508  ;;  %v507_v19 = vpop.permute.xlu0 %506 }
 0x16b   : > { %v553_v38 = vadd.f32 %v509_v18, %v1475_v58  ;;  %v552_v39 = vadd.f32 %v507_v19, %v1477_v59 }
 0x16e   : > { %v513_v20 = vpop.permute.xlu1 %512  ;;  %v511_v21 = vpop.permute.xlu0 %510 }
 0x16f   : > { %v555_v44 = vadd.f32 %v513_v20, %v1485_v62  ;;  %v554_v45 = vadd.f32 %v511_v21, %v1487_v63 }
 0x172   : > { %v517_v22 = vpop.permute.xlu1 %516  ;;  %v515_v23 = vpop.permute.xlu0 %514 }
 0x173   : > { %v557_v50 = vadd.f32 %v517_v22, %v1495_v2  ;;  %v556_v51 = vadd.f32 %v515_v23, %v1497_v3 }
 0x176   : > { %v521_v24 = vpop.permute.xlu1 %520  ;;  %v519_v25 = vpop.permute.xlu0 %518 }
 0x177   : > { %v559_v56 = vadd.f32 %v521_v24, %v1505_v6  ;;  %v558_v57 = vadd.f32 %v519_v25, %v1507_v7 }
 0x17a   : > { %v525_v26 = vpop.permute.xlu1 %524  ;;  %v523_v27 = vpop.permute.xlu0 %522 }
 0x17b   : > { %v561_v62 = vadd.f32 %v525_v26, %v1515_v10  ;;  %v560_v63 = vadd.f32 %v523_v27, %v1517_v11 }
 0x17e   : > { %v529_v28 = vpop.permute.xlu1 %528  ;;  %v527_v29 = vpop.permute.xlu0 %526 }
 0x17f   : > { %v563_v4 = vadd.f32 %v529_v28, %v1525_v12  ;;  %v562_v5 = vadd.f32 %v527_v29, %v1527_v13 }
 0x182   : > { %v533_v30 = vpop.permute.xlu1 %532  ;;  %v531_v31 = vpop.permute.xlu0 %530 }
 0x183   : > { %v565_v10 = vadd.f32 %v533_v30, %v1533_v14  ;;  %v564_v11 = vadd.f32 %v531_v31, %v1535_v15 }
 0x186   : > { %v569_v34 = vpop.permute.xlu1 %568  ;;  %v567_v35 = vpop.permute.xlu0 %566 }
 0x187   : > { %v615_v36 = vadd.f32 %v569_v34, %v551_v32  ;;  %v614_v37 = vadd.f32 %v567_v35, %v550_v33 }
 0x189   : > { %632 = vst.msk [vmem:[#allocation3 + $0x8] sm:$0xff] %vm630_vm3, %v615_v36  ;;  %631 = vst.msk [vmem:[#allocation3] sm:$0xff] %vm630_vm3, %v614_v37 }
 0x18a   : > { %v573_v40 = vpop.permute.xlu1 %572  ;;  %v571_v41 = vpop.permute.xlu0 %570 }
 0x18b   : > { %v617_v42 = vadd.f32 %v573_v40, %v553_v38  ;;  %v616_v43 = vadd.f32 %v571_v41, %v552_v39 }
 0x18d   : > { %634 = vst.msk [vmem:[#allocation3 + $0x18] sm:$0xff] %vm630_vm3, %v617_v42  ;;  %633 = vst.msk [vmem:[#allocation3 + $0x10] sm:$0xff] %vm630_vm3, %v616_v43 }
 0x18e   : > { %v577_v46 = vpop.permute.xlu1 %576  ;;  %v575_v47 = vpop.permute.xlu0 %574 }
 0x18f   : > { %v619_v48 = vadd.f32 %v577_v46, %v555_v44  ;;  %v618_v49 = vadd.f32 %v575_v47, %v554_v45 }
 0x191   : > { %636 = vst.msk [vmem:[#allocation3 + $0x28] sm:$0xff] %vm630_vm3, %v619_v48  ;;  %635 = vst.msk [vmem:[#allocation3 + $0x20] sm:$0xff] %vm630_vm3, %v618_v49 }
 0x192   : > { %v581_v52 = vpop.permute.xlu1 %580  ;;  %v579_v53 = vpop.permute.xlu0 %578 }
 0x193   : > { %v621_v54 = vadd.f32 %v581_v52, %v557_v50  ;;  %v620_v55 = vadd.f32 %v579_v53, %v556_v51 }
 0x195   : > { %638 = vst.msk [vmem:[#allocation3 + $0x38] sm:$0xff] %vm630_vm3, %v621_v54  ;;  %637 = vst.msk [vmem:[#allocation3 + $0x30] sm:$0xff] %vm630_vm3, %v620_v55 }
 0x196   : > { %v585_v58 = vpop.permute.xlu1 %584  ;;  %v583_v59 = vpop.permute.xlu0 %582 }
 0x197   : > { %v623_v60 = vadd.f32 %v585_v58, %v559_v56  ;;  %v622_v61 = vadd.f32 %v583_v59, %v558_v57 }
 0x199   : > { %640 = vst.msk [vmem:[#allocation3 + $0x48] sm:$0xff] %vm630_vm3, %v623_v60  ;;  %639 = vst.msk [vmem:[#allocation3 + $0x40] sm:$0xff] %vm630_vm3, %v622_v61 }
 0x19a   : > { %v589_v0 = vpop.permute.xlu1 %588  ;;  %v587_v1 = vpop.permute.xlu0 %586 }
 0x19b   : > { %v625_v2 = vadd.f32 %v589_v0, %v561_v62  ;;  %v624_v3 = vadd.f32 %v587_v1, %v560_v63 }
 0x19d   : > { %642 = vst.msk [vmem:[#allocation3 + $0x58] sm:$0xff] %vm630_vm3, %v625_v2  ;;  %641 = vst.msk [vmem:[#allocation3 + $0x50] sm:$0xff] %vm630_vm3, %v624_v3 }
 0x19e   : > { %v593_v6 = vpop.permute.xlu1 %592  ;;  %v591_v7 = vpop.permute.xlu0 %590 }
 0x19f   : > { %v627_v8 = vadd.f32 %v593_v6, %v563_v4  ;;  %v626_v9 = vadd.f32 %v591_v7, %v562_v5 }
 0x1a1   : > { %644 = vst.msk [vmem:[#allocation3 + $0x68] sm:$0xff] %vm630_vm3, %v627_v8  ;;  %643 = vst.msk [vmem:[#allocation3 + $0x60] sm:$0xff] %vm630_vm3, %v626_v9 }
 0x1a2   : > { %v597_v16 = vpop.permute.xlu1 %596  ;;  %v595_v12 = vpop.permute.xlu0 %594 }
 0x1a3   : > { %v629_v17 = vadd.f32 %v597_v16, %v565_v10  ;;  %v628_v13 = vadd.f32 %v595_v12, %v564_v11 }
 0x1a5   : > { %646 = vst.msk [vmem:[#allocation3 + $0x78] sm:$0xff] %vm630_vm3, %v629_v17  ;;  %645 = vst.msk [vmem:[#allocation3 + $0x70] sm:$0xff] %vm630_vm3, %v628_v13 }
 0x1a6 PF: > { %p1036_p12 = scmp.lt.s32.totalorder %s1266_s10, 1 }
 0x1a8   : > { %650 = sbr.rel (%p1036_p12) target bundleno = 472 (0x1d8), region = 36 }
 0x1af   : > { %653 = sbr.rel (%p1035_p9) target bundleno = 438 (0x1b6), region = 40  ;;  %v654_v14 = vld [vmem:[#allocation3] sm:$0x1] (!%p1035_p9)  ;;  %vm662_vm4 = vcmask (!%p1035_p9), 122880   ;;  %v655_v15 = vld [vmem:[#allocation3 + $0x10] sm:$0x1] (!%p1035_p9) }
 0x1b0   : > { %663 = vst.msk [vmem:[#allocation4 + $0x11] sm:$0x1] (!%p1035_p9), %vm662_vm4, %v654_v14  ;;  %664 = vst.msk [vmem:[#allocation4 + $0x29] sm:$0x1] (!%p1035_p9), %vm662_vm4, %v655_v15  ;;  %v656_v18 = vld [vmem:[#allocation3 + $0x20] sm:$0x1] (!%p1035_p9) }
 0x1b1   : > { %v657_v19 = vld [vmem:[#allocation3 + $0x30] sm:$0x1] (!%p1035_p9)  ;;  %v658_v20 = vld [vmem:[#allocation3 + $0x40] sm:$0x1] (!%p1035_p9)  ;;  %665 = vst.msk [vmem:[#allocation4 + $0x41] sm:$0x1] (!%p1035_p9), %vm662_vm4, %v656_v18 }
 0x1b2   : > { %666 = vst.msk [vmem:[#allocation4 + $0x59] sm:$0x1] (!%p1035_p9), %vm662_vm4, %v657_v19  ;;  %667 = vst.msk [vmem:[#allocation4 + $0x71] sm:$0x1] (!%p1035_p9), %vm662_vm4, %v658_v20  ;;  %v659_v21 = vld [vmem:[#allocation3 + $0x50] sm:$0x1] (!%p1035_p9) }
 0x1b3   : > { %v660_v22 = vld [vmem:[#allocation3 + $0x60] sm:$0x1] (!%p1035_p9)  ;;  %v661_v23 = vld [vmem:[#allocation3 + $0x70] sm:$0x1] (!%p1035_p9)  ;;  %668 = vst.msk [vmem:[#allocation4 + $0x89] sm:$0x1] (!%p1035_p9), %vm662_vm4, %v659_v21 }
 0x1b4   : > { %669 = vst.msk [vmem:[#allocation4 + $0xa1] sm:$0x1] (!%p1035_p9), %vm662_vm4, %v660_v22  ;;  %670 = vst.msk [vmem:[#allocation4 + $0xb9] sm:$0x1] (!%p1035_p9), %vm662_vm4, %v661_v23 }
 0x1b6 PF: > { %p1038_p13 = scmp.ne.s32.totalorder %s1266_s10, 1 }
 0x1b7   : > { %v675_v24 = vld [vmem:[#allocation4 + $0xf] sm:$0x1] (!%p1038_p13)  ;;  %vm683_vm5 = vcmask (!%p1038_p13), 122880   ;;  %v676_v25 = vld [vmem:[#allocation4 + $0x27] sm:$0x1] (!%p1038_p13) }
 0x1b8   : > { %674 = sbr.rel (%p1038_p13) target bundleno = 447 (0x1bf), region = 44  ;;  %684 = vst.msk [vmem:[#allocation4 + $0x11] sm:$0x1] (!%p1038_p13), %vm683_vm5, %v675_v24  ;;  %685 = vst.msk [vmem:[#allocation4 + $0x29] sm:$0x1] (!%p1038_p13), %vm683_vm5, %v676_v25 }
 0x1b9   : > { %v677_v26 = vld [vmem:[#allocation4 + $0x3f] sm:$0x1] (!%p1038_p13)  ;;  %v678_v27 = vld [vmem:[#allocation4 + $0x57] sm:$0x1] (!%p1038_p13)  ;;  %v679_v28 = vld [vmem:[#allocation4 + $0x6f] sm:$0x1] (!%p1038_p13) }
 0x1ba   : > { %686 = vst.msk [vmem:[#allocation4 + $0x41] sm:$0x1] (!%p1038_p13), %vm683_vm5, %v677_v26  ;;  %687 = vst.msk [vmem:[#allocation4 + $0x59] sm:$0x1] (!%p1038_p13), %vm683_vm5, %v678_v27  ;;  %v680_v29 = vld [vmem:[#allocation4 + $0x87] sm:$0x1] (!%p1038_p13) }
 0x1bb   : > { %688 = vst.msk [vmem:[#allocation4 + $0x71] sm:$0x1] (!%p1038_p13), %vm683_vm5, %v679_v28  ;;  %v681_v30 = vld [vmem:[#allocation4 + $0x9f] sm:$0x1] (!%p1038_p13)  ;;  %v682_v31 = vld [vmem:[#allocation4 + $0xb7] sm:$0x1] (!%p1038_p13) }
 0x1bc   : > { %689 = vst.msk [vmem:[#allocation4 + $0x89] sm:$0x1] (!%p1038_p13), %vm683_vm5, %v680_v29  ;;  %690 = vst.msk [vmem:[#allocation4 + $0xa1] sm:$0x1] (!%p1038_p13), %vm683_vm5, %v681_v30 }
 0x1bd   : > { %691 = vst.msk [vmem:[#allocation4 + $0xb9] sm:$0x1] (!%p1038_p13), %vm683_vm5, %v682_v31 }
 0x1bf PF: > { %v692_v32 = vld [vmem:[#allocation4] sm:$0xff]  ;;  %v693_v36 = vld [vmem:[#allocation4 + $0x8] sm:$0xff]  ;;  %v694_v40 = vld [vmem:[#allocation4 + $0x18] sm:$0xff]  ;;  %vm788_vm6 = vcmask 130048  }
 0x1c0   : > { %v708_v33 = vld [vmem:[#allocation4 + $0x1] sm:$0xff]  ;;  %v709_v37 = vld [vmem:[#allocation4 + $0x9] sm:$0xff]  ;;  %v710_v41 = vld [vmem:[#allocation4 + $0x19] sm:$0xff] }
 0x1c1   : > { %v740_v34 = vld [vmem:[#allocation4 + $0x2] sm:$0xff]  ;;  %v724_v35 = vadd.f32 %v708_v33, %v692_v32  ;;  %v741_v38 = vld [vmem:[#allocation4 + $0xa] sm:$0xff]  ;;  %v725_v39 = vadd.f32 %v709_v37, %v693_v36  ;;  %v742_v42 = vld [vmem:[#allocation4 + $0x1a] sm:$0xff]  ;;  %v726_v44 = vadd.f32 %v710_v41, %v694_v40 }
 0x1c2   : > { %v695_v45 = vld [vmem:[#allocation4 + $0x20] sm:$0xff]  ;;  %v696_v50 = vld [vmem:[#allocation4 + $0x30] sm:$0xff]  ;;  %v697_v56 = vld [vmem:[#allocation4 + $0x38] sm:$0xff] }
 0x1c3   : > { %v756_v43 = vadd.f32 %v740_v34, %v724_v35  ;;  %v711_v46 = vld [vmem:[#allocation4 + $0x21] sm:$0xff]  ;;  %v757_v48 = vadd.f32 %v741_v38, %v725_v39  ;;  %v712_v51 = vld [vmem:[#allocation4 + $0x31] sm:$0xff]  ;;  %v758_v54 = vadd.f32 %v742_v42, %v726_v44  ;;  %v713_v57 = vld [vmem:[#allocation4 + $0x39] sm:$0xff] }
 0x1c4   : > { %v743_v47 = vld [vmem:[#allocation4 + $0x22] sm:$0xff]  ;;  %v727_v49 = vadd.f32 %v711_v46, %v695_v45  ;;  %v744_v52 = vld [vmem:[#allocation4 + $0x32] sm:$0xff]  ;;  %v728_v55 = vadd.f32 %v712_v51, %v696_v50  ;;  %v745_v58 = vld [vmem:[#allocation4 + $0x3a] sm:$0xff]  ;;  %v729_v61 = vadd.f32 %v713_v57, %v697_v56 }
 0x1c5   : > { %v772_v53 = vmul.f32 0.11111111, %v756_v43  ;;  %v773_v59 = vmul.f32 0.11111111, %v757_v48  ;;  %v698_v62 = vld [vmem:[#allocation4 + $0x48] sm:$0xff]  ;;  %v699_v4 = vld [vmem:[#allocation4 + $0x50] sm:$0xff] }
 0x1c6   : > { %v759_v60 = vadd.f32 %v743_v47, %v727_v49  ;;  %v714_v63 = vld [vmem:[#allocation4 + $0x49] sm:$0xff]  ;;  %v774_v1 = vmul.f32 0.11111111, %v758_v54  ;;  %v760_v2 = vadd.f32 %v744_v52, %v728_v55  ;;  %v715_v5 = vld [vmem:[#allocation4 + $0x51] sm:$0xff]  ;;  %v761_v8 = vadd.f32 %v745_v58, %v729_v61  ;;  %v700_v10 = vld [vmem:[#allocation4 + $0x60] sm:$0xff] }
 0x1c7   : > { %v746_v0 = vld [vmem:[#allocation4 + $0x4a] sm:$0xff]  ;;  %789 = vst.msk [vmem:[%s1392_s23] sm:$0xff] %vm788_vm6, %v772_v53  ;;  %v730_v3 = vadd.f32 %v714_v63, %v698_v62  ;;  %v747_v6 = vld [vmem:[#allocation4 + $0x52] sm:$0xff]  ;;  %790 = vst.msk [vmem:[%s1392_s23 + $0x8] sm:$0xff] %vm788_vm6, %v773_v59  ;;  %v731_v9 = vadd.f32 %v715_v5, %v699_v4 }
 0x1c8   : > { %v775_v7 = vmul.f32 0.11111111, %v759_v60  ;;  %v716_v11 = vld [vmem:[#allocation4 + $0x61] sm:$0xff]  ;;  %791 = vst.msk [vmem:[%s1392_s23 + $0x10] sm:$0xff] %vm788_vm6, %v774_v1  ;;  %v776_v12 = vmul.f32 0.11111111, %v760_v2 }
 0x1c9   : > { %v748_v16 = vld [vmem:[#allocation4 + $0x62] sm:$0xff]  ;;  %v762_v17 = vadd.f32 %v746_v0, %v730_v3  ;;  %v732_v13 = vadd.f32 %v716_v11, %v700_v10  ;;  %v749_v18 = vld [vmem:[#allocation4 + $0x6a] sm:$0xff]  ;;  %v777_v19 = vmul.f32 0.11111111, %v761_v8  ;;  %v763_v20 = vadd.f32 %v747_v6, %v731_v9  ;;  %v702_v22 = vld [vmem:[#allocation4 + $0x78] sm:$0xff] }
 0x1ca   : > { %v701_v14 = vld [vmem:[#allocation4 + $0x68] sm:$0xff]  ;;  %792 = vst.msk [vmem:[%s1392_s23 + $0x18] sm:$0xff] %vm788_vm6, %v775_v7  ;;  %v718_v23 = vld [vmem:[#allocation4 + $0x79] sm:$0xff]  ;;  %793 = vst.msk [vmem:[%s1392_s23 + $0x20] sm:$0xff] %vm788_vm6, %v776_v12 }
 0x1cb   : > { %v717_v15 = vld [vmem:[#allocation4 + $0x69] sm:$0xff]  ;;  %v750_v24 = vld [vmem:[#allocation4 + $0x7a] sm:$0xff]  ;;  %v778_v25 = vmul.f32 0.11111111, %v762_v17  ;;  %v764_v26 = vadd.f32 %v748_v16, %v732_v13  ;;  %v734_v27 = vadd.f32 %v718_v23, %v702_v22  ;;  %794 = vst.msk [vmem:[%s1392_s23 + $0x28] sm:$0xff] %vm788_vm6, %v777_v19  ;;  %v720_v35 = vld [vmem:[#allocation4 + $0x91] sm:$0xff] }
 0x1cc   : > { %v733_v21 = vadd.f32 %v717_v15, %v701_v14  ;;  %v703_v28 = vld [vmem:[#allocation4 + $0x80] sm:$0xff]  ;;  %v779_v31 = vmul.f32 0.11111111, %v763_v20  ;;  %v704_v34 = vld [vmem:[#allocation4 + $0x90] sm:$0xff]  ;;  %v705_v40 = vld [vmem:[#allocation4 + $0x98] sm:$0xff] }
 0x1cd   : > { %v719_v29 = vld [vmem:[#allocation4 + $0x81] sm:$0xff]  ;;  %v752_v36 = vld [vmem:[#allocation4 + $0x92] sm:$0xff]  ;;  %795 = vst.msk [vmem:[%s1392_s23 + $0x30] sm:$0xff] %vm788_vm6, %v778_v25  ;;  %v780_v37 = vmul.f32 0.11111111, %v764_v26  ;;  %v766_v38 = vadd.f32 %v750_v24, %v734_v27  ;;  %v736_v39 = vadd.f32 %v720_v35, %v704_v34  ;;  %v722_v47 = vld [vmem:[#allocation4 + $0xa9] sm:$0xff] }
 0x1ce   : > { %v751_v30 = vld [vmem:[#allocation4 + $0x82] sm:$0xff]  ;;  %v765_v32 = vadd.f32 %v749_v18, %v733_v21  ;;  %v735_v33 = vadd.f32 %v719_v29, %v703_v28  ;;  %v721_v41 = vld [vmem:[#allocation4 + $0x99] sm:$0xff]  ;;  %796 = vst.msk [vmem:[%s1392_s23 + $0x38] sm:$0xff] %vm788_vm6, %v779_v31  ;;  %v754_v48 = vld [vmem:[#allocation4 + $0xaa] sm:$0xff] }
 0x1cf   : > { %v753_v42 = vld [vmem:[#allocation4 + $0x9a] sm:$0xff]  ;;  %v737_v45 = vadd.f32 %v721_v41, %v705_v40  ;;  %v706_v46 = vld [vmem:[#allocation4 + $0xa8] sm:$0xff]  ;;  %797 = vst.msk [vmem:[%s1392_s23 + $0x40] sm:$0xff] %vm788_vm6, %v780_v37  ;;  %v782_v49 = vmul.f32 0.11111111, %v766_v38  ;;  %v768_v50 = vadd.f32 %v752_v36, %v736_v39  ;;  %v707_v52 = vld [vmem:[#allocation4 + $0xb0] sm:$0xff] }
 0x1d0   : > { %v781_v43 = vmul.f32 0.11111111, %v765_v32  ;;  %v767_v44 = vadd.f32 %v751_v30, %v735_v33  ;;  %v738_v51 = vadd.f32 %v722_v47, %v706_v46  ;;  %v723_v53 = vld [vmem:[#allocation4 + $0xb1] sm:$0xff] }
 0x1d1   : > { %v755_v54 = vld [vmem:[#allocation4 + $0xb2] sm:$0xff]  ;;  %v769_v56 = vadd.f32 %v753_v42, %v737_v45  ;;  %v739_v57 = vadd.f32 %v723_v53, %v707_v52  ;;  %799 = vst.msk [vmem:[%s1392_s23 + $0x50] sm:$0xff] %vm788_vm6, %v782_v49  ;;  %v784_v58 = vmul.f32 0.11111111, %v768_v50 }
 0x1d2   : > { %798 = vst.msk [vmem:[%s1392_s23 + $0x48] sm:$0xff] %vm788_vm6, %v781_v43  ;;  %v783_v55 = vmul.f32 0.11111111, %v767_v44  ;;  %v770_v59 = vadd.f32 %v754_v48, %v738_v51 }
 0x1d3   : > { %v785_v60 = vmul.f32 0.11111111, %v769_v56  ;;  %v771_v61 = vadd.f32 %v755_v54, %v739_v57  ;;  %801 = vst.msk [vmem:[%s1392_s23 + $0x60] sm:$0xff] %vm788_vm6, %v784_v58 }
 0x1d4   : > { %800 = vst.msk [vmem:[%s1392_s23 + $0x58] sm:$0xff] %vm788_vm6, %v783_v55  ;;  %v786_v62 = vmul.f32 0.11111111, %v770_v59 }
 0x1d5   : > { %802 = vst.msk [vmem:[%s1392_s23 + $0x68] sm:$0xff] %vm788_vm6, %v785_v60  ;;  %v787_v63 = vmul.f32 0.11111111, %v771_v61 }
 0x1d6   : > { %803 = vst.msk [vmem:[%s1392_s23 + $0x70] sm:$0xff] %vm788_vm6, %v786_v62 }
 0x1d7   : > { %804 = vst.msk [vmem:[%s1392_s23 + $0x78] sm:$0xff] %vm788_vm6, %v787_v63 }
 0x1d8 PF: > { %807 = sbr.rel (%p1035_p9) target bundleno = 510 (0x1fe), region = 48  ;;  %p1040_p1 = scmp.ne.s32.totalorder (!%p1035_p9), %s1266_s10, 0 }
 0x1df   : > { %811 = sbr.rel (%p1040_p1) target bundleno = 493 (0x1ed), region = 52  ;;  %v812_v0 = vld [vmem:[#allocation3] sm:$0xff] (!%p1040_p1)  ;;  %vm828_vm7 = vcmask (!%p1040_p1), 130048   ;;  %v813_v1 = vld [vmem:[#allocation3 + $0x8] sm:$0xff] (!%p1040_p1)  ;;  %v814_v2 = vld [vmem:[#allocation3 + $0x10] sm:$0xff] (!%p1040_p1)  ;;  %vm853_vm8 = vcmask (!%p1040_p1), 122880  }
 0x1e0   : > { %829 = vst.msk [vmem:[#allocation4 + $0x1] sm:$0xff] (!%p1040_p1), %vm828_vm7, %v812_v0  ;;  %830 = vst.msk [vmem:[#allocation4 + $0x9] sm:$0xff] (!%p1040_p1), %vm828_vm7, %v813_v1  ;;  %v815_v3 = vld [vmem:[#allocation3 + $0x18] sm:$0xff] (!%p1040_p1)  ;;  %v816_v4 = vld [vmem:[#allocation3 + $0x20] sm:$0xff] (!%p1040_p1) }
 0x1e1   : > { %831 = vst.msk [vmem:[#allocation4 + $0x19] sm:$0xff] (!%p1040_p1), %vm828_vm7, %v814_v2  ;;  %v817_v5 = vld [vmem:[#allocation3 + $0x28] sm:$0xff] (!%p1040_p1)  ;;  %832 = vst.msk [vmem:[#allocation4 + $0x21] sm:$0xff] (!%p1040_p1), %vm828_vm7, %v815_v3  ;;  %v818_v6 = vld [vmem:[#allocation3 + $0x30] sm:$0xff] (!%p1040_p1) }
 0x1e2   : > { %833 = vst.msk [vmem:[#allocation4 + $0x31] sm:$0xff] (!%p1040_p1), %vm828_vm7, %v816_v4  ;;  %834 = vst.msk [vmem:[#allocation4 + $0x39] sm:$0xff] (!%p1040_p1), %vm828_vm7, %v817_v5  ;;  %v819_v7 = vld [vmem:[#allocation3 + $0x38] sm:$0xff] (!%p1040_p1)  ;;  %v820_v8 = vld [vmem:[#allocation3 + $0x40] sm:$0xff] (!%p1040_p1) }
 0x1e3   : > { %835 = vst.msk [vmem:[#allocation4 + $0x49] sm:$0xff] (!%p1040_p1), %vm828_vm7, %v818_v6  ;;  %836 = vst.msk [vmem:[#allocation4 + $0x51] sm:$0xff] (!%p1040_p1), %vm828_vm7, %v819_v7  ;;  %v821_v9 = vld [vmem:[#allocation3 + $0x48] sm:$0xff] (!%p1040_p1)  ;;  %v822_v10 = vld [vmem:[#allocation3 + $0x50] sm:$0xff] (!%p1040_p1) }
 0x1e4   : > { %837 = vst.msk [vmem:[#allocation4 + $0x61] sm:$0xff] (!%p1040_p1), %vm828_vm7, %v820_v8  ;;  %v823_v11 = vld [vmem:[#allocation3 + $0x58] sm:$0xff] (!%p1040_p1)  ;;  %838 = vst.msk [vmem:[#allocation4 + $0x69] sm:$0xff] (!%p1040_p1), %vm828_vm7, %v821_v9  ;;  %v824_v16 = vld [vmem:[#allocation3 + $0x60] sm:$0xff] (!%p1040_p1) }
 0x1e5   : > { %839 = vst.msk [vmem:[#allocation4 + $0x79] sm:$0xff] (!%p1040_p1), %vm828_vm7, %v822_v10  ;;  %840 = vst.msk [vmem:[#allocation4 + $0x81] sm:$0xff] (!%p1040_p1), %vm828_vm7, %v823_v11  ;;  %v825_v12 = vld [vmem:[#allocation3 + $0x68] sm:$0xff] (!%p1040_p1)  ;;  %v826_v17 = vld [vmem:[#allocation3 + $0x70] sm:$0xff] (!%p1040_p1) }
 0x1e6   : > { %841 = vst.msk [vmem:[#allocation4 + $0x91] sm:$0xff] %vm828_vm7, %v824_v16  ;;  %842 = vst.msk [vmem:[#allocation4 + $0x99] sm:$0xff] %vm828_vm7, %v825_v12  ;;  %v827_v13 = vld [vmem:[#allocation3 + $0x78] sm:$0xff]  ;;  %v845_v14 = vld [vmem:[#allocation3 + $0x1] sm:$0x1] }
 0x1e7   : > { %843 = vst.msk [vmem:[#allocation4 + $0xa9] sm:$0xff] %vm828_vm7, %v826_v17  ;;  %v846_v15 = vld [vmem:[#allocation3 + $0x11] sm:$0x1]  ;;  %844 = vst.msk [vmem:[#allocation4 + $0xb1] sm:$0xff] %vm828_vm7, %v827_v13  ;;  %v847_v18 = vld [vmem:[#allocation3 + $0x21] sm:$0x1] }
 0x1e8   : > { %854 = vst.msk [vmem:[#allocation4] sm:$0x1] %vm853_vm8, %v845_v14  ;;  %855 = vst.msk [vmem:[#allocation4 + $0x18] sm:$0x1] %vm853_vm8, %v846_v15  ;;  %v848_v19 = vld [vmem:[#allocation3 + $0x31] sm:$0x1] }
 0x1e9   : > { %v849_v20 = vld [vmem:[#allocation3 + $0x41] sm:$0x1]  ;;  %856 = vst.msk [vmem:[#allocation4 + $0x30] sm:$0x1] %vm853_vm8, %v847_v18  ;;  %857 = vst.msk [vmem:[#allocation4 + $0x48] sm:$0x1] %vm853_vm8, %v848_v19 }
 0x1ea   : > { %858 = vst.msk [vmem:[#allocation4 + $0x60] sm:$0x1] %vm853_vm8, %v849_v20  ;;  %v850_v21 = vld [vmem:[#allocation3 + $0x51] sm:$0x1]  ;;  %v851_v22 = vld [vmem:[#allocation3 + $0x61] sm:$0x1] }
 0x1eb   : > { %v852_v23 = vld [vmem:[#allocation3 + $0x71] sm:$0x1]  ;;  %859 = vst.msk [vmem:[#allocation4 + $0x78] sm:$0x1] %vm853_vm8, %v850_v21  ;;  %860 = vst.msk [vmem:[#allocation4 + $0x90] sm:$0x1] %vm853_vm8, %v851_v22 }
 0x1ec   : > { %861 = vst.msk [vmem:[#allocation4 + $0xa8] sm:$0x1] %vm853_vm8, %v852_v23 }
 0x1ed PF: > { %p1041_p4 = scmp.le.s32.totalorder %s1266_s10, 0 }
 0x1ee   : > { %v866_v24 = vld [vmem:[#allocation4 + $0x10] sm:$0x1] (!%p1041_p4)  ;;  %vm874_vm9 = vcmask (!%p1041_p4), 122880   ;;  %v883_v26 = vld [vmem:[#allocation3] sm:$0xff] (!%p1041_p4)  ;;  %v873_v32 = vld [vmem:[#allocation4 + $0xb8] sm:$0x1] (!%p1041_p4) }
 0x1ef   : > { %865 = sbr.rel (%p1041_p4) target bundleno = 510 (0x1fe), region = 56  ;;  %v867_v25 = vld [vmem:[#allocation4 + $0x28] sm:$0x1] (!%p1041_p4)  ;;  %875 = vst.msk [vmem:[#allocation4] sm:$0x1] (!%p1041_p4), %vm874_vm9, %v866_v24  ;;  %vm899_vm10 = vcmask (!%p1041_p4), 130048  }
 0x1f0   : > { %876 = vst.msk [vmem:[#allocation4 + $0x18] sm:$0x1] (!%p1041_p4), %vm874_vm9, %v867_v25  ;;  %v868_v27 = vld [vmem:[#allocation4 + $0x40] sm:$0x1] (!%p1041_p4)  ;;  %882 = vst.msk [vmem:[#allocation4 + $0xa8] sm:$0x1] (!%p1041_p4), %vm874_vm9, %v873_v32 }
 0x1f1   : > { %v869_v28 = vld [vmem:[#allocation4 + $0x58] sm:$0x1] (!%p1041_p4)  ;;  %877 = vst.msk [vmem:[#allocation4 + $0x30] sm:$0x1] (!%p1041_p4), %vm874_vm9, %v868_v27  ;;  %v884_v33 = vld [vmem:[#allocation3 + $0x8] sm:$0xff] (!%p1041_p4)  ;;  %v885_v34 = vld [vmem:[#allocation3 + $0x10] sm:$0xff] (!%p1041_p4) }
 0x1f2   : > { %v870_v29 = vld [vmem:[#allocation4 + $0x70] sm:$0x1] (!%p1041_p4)  ;;  %878 = vst.msk [vmem:[#allocation4 + $0x48] sm:$0x1] (!%p1041_p4), %vm874_vm9, %v869_v28  ;;  %v886_v35 = vld [vmem:[#allocation3 + $0x18] sm:$0xff] (!%p1041_p4)  ;;  %v887_v36 = vld [vmem:[#allocation3 + $0x20] sm:$0xff] (!%p1041_p4) }
 0x1f3   : > { %879 = vst.msk [vmem:[#allocation4 + $0x60] sm:$0x1] (!%p1041_p4), %vm874_vm9, %v870_v29  ;;  %v871_v30 = vld [vmem:[#allocation4 + $0x88] sm:$0x1] (!%p1041_p4)  ;;  %v889_v38 = vld [vmem:[#allocation3 + $0x30] sm:$0xff] (!%p1041_p4)  ;;  %v890_v39 = vld [vmem:[#allocation3 + $0x38] sm:$0xff] (!%p1041_p4) }
 0x1f4   : > { %v872_v31 = vld [vmem:[#allocation4 + $0xa0] sm:$0x1] (!%p1041_p4)  ;;  %880 = vst.msk [vmem:[#allocation4 + $0x78] sm:$0x1] (!%p1041_p4), %vm874_vm9, %v871_v30  ;;  %v888_v37 = vld [vmem:[#allocation3 + $0x28] sm:$0xff] (!%p1041_p4)  ;;  %v893_v42 = vld [vmem:[#allocation3 + $0x50] sm:$0xff] (!%p1041_p4) }
 0x1f5   : > { %881 = vst.msk [vmem:[#allocation4 + $0x90] sm:$0x1] (!%p1041_p4), %vm874_vm9, %v872_v31  ;;  %v891_v40 = vld [vmem:[#allocation3 + $0x40] sm:$0xff] (!%p1041_p4)  ;;  %v892_v41 = vld [vmem:[#allocation3 + $0x48] sm:$0xff] (!%p1041_p4)  ;;  %v894_v43 = vld [vmem:[#allocation3 + $0x58] sm:$0xff] (!%p1041_p4) }
 0x1f6   : > { %900 = vst.msk [vmem:[#allocation4 + $0x1] sm:$0xff] %vm899_vm10, %v883_v26  ;;  %901 = vst.msk [vmem:[#allocation4 + $0x9] sm:$0xff] %vm899_vm10, %v884_v33  ;;  %v895_v44 = vld [vmem:[#allocation3 + $0x60] sm:$0xff]  ;;  %v896_v45 = vld [vmem:[#allocation3 + $0x68] sm:$0xff] }
 0x1f7   : > { %902 = vst.msk [vmem:[#allocation4 + $0x19] sm:$0xff] %vm899_vm10, %v885_v34  ;;  %903 = vst.msk [vmem:[#allocation4 + $0x21] sm:$0xff] %vm899_vm10, %v886_v35  ;;  %v897_v46 = vld [vmem:[#allocation3 + $0x70] sm:$0xff]  ;;  %v898_v47 = vld [vmem:[#allocation3 + $0x78] sm:$0xff] }
 0x1f8   : > { %904 = vst.msk [vmem:[#allocation4 + $0x31] sm:$0xff] %vm899_vm10, %v887_v36  ;;  %905 = vst.msk [vmem:[#allocation4 + $0x39] sm:$0xff] %vm899_vm10, %v888_v37 }
 0x1f9   : > { %906 = vst.msk [vmem:[#allocation4 + $0x49] sm:$0xff] %vm899_vm10, %v889_v38  ;;  %907 = vst.msk [vmem:[#allocation4 + $0x51] sm:$0xff] %vm899_vm10, %v890_v39 }
 0x1fa   : > { %908 = vst.msk [vmem:[#allocation4 + $0x61] sm:$0xff] %vm899_vm10, %v891_v40  ;;  %909 = vst.msk [vmem:[#allocation4 + $0x69] sm:$0xff] %vm899_vm10, %v892_v41 }
 0x1fb   : > { %910 = vst.msk [vmem:[#allocation4 + $0x79] sm:$0xff] %vm899_vm10, %v893_v42  ;;  %911 = vst.msk [vmem:[#allocation4 + $0x81] sm:$0xff] %vm899_vm10, %v894_v43 }
 0x1fc   : > { %912 = vst.msk [vmem:[#allocation4 + $0x91] sm:$0xff] %vm899_vm10, %v895_v44  ;;  %913 = vst.msk [vmem:[#allocation4 + $0x99] sm:$0xff] %vm899_vm10, %v896_v45 }
 0x1fd   : > { %914 = vst.msk [vmem:[#allocation4 + $0xa9] sm:$0xff] %vm899_vm10, %v897_v46  ;;  %915 = vst.msk [vmem:[#allocation4 + $0xb1] sm:$0xff] %vm899_vm10, %v898_v47 }
 0x1fe PF: > { %s1043_s27 = sadd.s32 4294967295, %s1266_s10  ;;  %s936_s28 = sshll.u32 %s1392_s23, 4  ;;  %s1679_s28 = int_to_ptr.vmem [resolvable:$true] %s936_s28 }
 0x1ff   : > { %p925_p10 = scmp.gt.s32.totalorder %s1043_s27, 0  ;;  %s1688_s4 = scalar_lea.sflag [#allocation7], %s163_s22 }
 0x200   : > { %s1174_s5 = scalar_lea.vmem %s1679_s28, 2048  ;;  %p1748_p0 = scmp.ne.s32.totalorder %s1743_s18, 0 }
 0x201   : > { %s1758_s27 = smov (!%p925_p10, %s1043_s27), 0  ;;  %p1175_p11 = scmp.ne.s32.totalorder %s1679_s28, %s1174_s5 }
 0x202   : > { %s1049_s29 = sshll.u32 %s1758_s27, 8  ;;  %s1283_s10 = smov [#allocation8]  }
 0x203   : > { %s1684_s3 = scalar_lea.hbm %s1737_s1, %s1049_s29  ;;  %p1176_p2 = pnand %p1175_p11, %p1748_p0 }
 0x204   : > { %s1178_s8 = sshll.u32 %s1283_s10, 4  ;;  %s1179_s8 = int_to_ptr.vmem [resolvable:$false] %s1178_s8 }
 0x205   : > { %p1177_p5 = pneg %p1176_p2  ;;  %s1180_s13 = scalar_lea.vmem %s1179_s8, 4096 }
 0x206   : > { %p1181_p7 = scmp.lt.s32.totalorder %s1679_s28, %s1179_s8  ;;  %p1182_p8 = scmp.lt.s32.totalorder %s1180_s13, %s1174_s5 }
 0x208   : > { %p1183_p3 = por %p1182_p8, %p1181_p7 }
 0x20a   : > { %p1184_p6 = pnand %p1183_p3, %p1177_p5 }
 0x20c   : > { %1187 = shalt.err (!%p1184_p6)
}
 0x20d   : > { %s1188_s14 = scalar_lea.hbm %s1684_s3, 2048  ;;  %s1192_s22 = scalar_lea.hbm %s1737_s1, 2048 }
 0x20e   : > { %p1189_p9 = scmp.ne.s32.totalorder %s1684_s3, %s1188_s14  ;;  %p1193_p1 = scmp.lt.u32.totalorder %s1684_s3, %s1737_s1 }
 0x20f   : > { %p1194_p4 = scmp.lt.u32.totalorder %s1192_s22, %s1188_s14  ;;  %p1196_p11 = scmp.lt.u32.totalorder %s1188_s14, %s1684_s3 }
 0x210   : > { %p1190_p12 = pnand %p1189_p9, %p1748_p0 }
 0x211   : > { %p1195_p10 = por %p1194_p4, %p1193_p1 }
 0x212   : > { %p1191_p13 = pneg %p1190_p12 }
 0x213   : > { %p1197_p2 = por %p1196_p11, %p1195_p10 }
 0x215   : > { %p1198_p5 = pnand %p1197_p2, %p1191_p13 }
 0x217   : > { %1201 = shalt.err (!%p1198_p5)
}
 0x218   : > { %s1284_s17 = smov 128   ;;  %s1285_s24 = smov 8  }
 0x219   : > { %1052 = dma.vmem_to_hbm [thread:$0]  (%p1748_p0), %s1679_s28, 2048, %s1684_s3, %s1688_s4, %s1284_s17, %s1284_s17, %s1285_s24  }
 0x21a PF: > { %s951_s25 = sand.u32 1, %s1250_s6   ;;  %p1749_p7 = scmp.ne.s32.totalorder %s1744_s19, 0 }
 0x21b   : > { %p1750_p8 = scmp.ge.s32.totalorder %s1274_s12, 2  ;;  %s952_s26 = scalar_lea.sflag [#allocation7], %s951_s25 }
 0x21d   : > { %p1059_p3 = pnand %p1750_p8, %p1749_p7 }
 0x21f   : > { %1243 = dma.done.wait (!%p1059_p3), %s952_s26, 2048  }
 0x220   : > { %1245 = vsyncadd (!%p1059_p3), %s952_s26, 4294965248  ;;  %s17_s12 = sadd.s32 1, %s1274_s12   ;;  %s1751_s6 = smov %s1254_s7 }
 0x221   : > { %p14_p6 = scmp.ge.s32.totalorder %s17_s12, 4   ;;  %s1721_s7 = smov 0  }
 0x222   : > { %s1752_s8 = smov %s1262_s9  ;;  %s1726_s9 = smov 0  }
 0x223   : > { %s1753_s10 = smov %s1270_s11  ;;  %s1754_s11 = smov %s1756_s15 }
 0x224   :  { %16 = sbr.rel (!%p14_p6) target bundleno = 7 (0x7), region = 97 }
 0x22b   :  { %957 = vsyncpa [#allocation6], 1 }
 0x22c   :  { %959 = vsyncpa [#allocation6 + $0x1], 1 }
 0x22d   :  { %960 = vsyncpa [#allocation7], 1 }
 0x22e   :  { %962 = vsyncpa [#allocation7 + $0x1], 1 }

</bundles_post_ra>
